<compile_context>
chip_gen: v6e
topology: v6e:2x2x1
jax: 0.10.0
libtpu: 0.0.40
codegen_flags: <defaults>
</compile_context>

<pallas_src>
import jax
import jax.numpy as jnp
from jax import lax
from jax.experimental import pallas as pl
from jax.experimental.pallas import tpu as pltpu


# ---------------------------------------------------------------------------
# Tiling helpers (VMEM- and dtype-aware)
# ---------------------------------------------------------------------------
def _pick_row_tile(n, h, itemsize, x_double_buffer_budget=12 << 20):
    """Row tile for streaming the [N, H] activation.

    Constraints: multiple of 128 (lane-dense out/mask blocks), divides N (no
    partial blocks), double-buffered x tile fits a conservative VMEM budget
    that works on v5e (16 MiB scoped default), v6e (32 MiB) and v7x (32 MiB
    scoped / 64 MiB physical), and grid_n >= 2 so the "parallel" axis can
    split across v7x's two TensorCores.
    """
    if n % 128 != 0 or n < 256:
        # Tiny / ragged N (demo path): single full-array block.
        # TODO(synk): pad N to a multiple of 128 for production B*S shapes.
        return n
    max_rows = max(128, x_double_buffer_budget // (2 * h * itemsize))
    max_rows = min(max_rows, n // 2)          # guarantee >= 2 grid steps
    t = (max_rows // 128) * 128
    while t > 128 and n % t != 0:
        t -= 128
    return max(t, 128)


def _pick_col_tile(h, itemsize, w_double_buffer_budget=8 << 20):
    """Column tile for the pooler's [H, H] dense weight (guards large H)."""
    if h % 128 != 0 or h < 256:
        return h
    max_cols = max(128, w_double_buffer_budget // (2 * h * itemsize))
    t = min((max_cols // 128) * 128, h)
    while t > 128 and h % t != 0:
        t -= 128
    return max(t, 128)


def _vmem_limit(need_bytes):
    """Explicit scoped-VMEM limit: need + headroom, floored at the smallest
    per-generation default (16 MiB on v5e), capped well under v7x's 64 MiB
    physical per-core VMEM."""
    return int(min(max(need_bytes * 3 // 2 + (2 << 20), 16 << 20), 40 << 20))


# ---------------------------------------------------------------------------
# Kernel 1: fused qa_outputs + sp head over a row tile of sequence_output.
#   w:    [K, H]        (K = 3: start, end, sp — transposed fused weight)
#   x:    [tile_N, H]   (row tile, encoder-native dtype; cast in VMEM)
#   mask: [1, tile_N]   (paragraph_mask, lane-dense, int32)
#   b:    [K, 1]        (fused bias, folded in-kernel)
#   out:  [K, tile_N]   (lane-dense logits; rows 0/1 masked with -inf)
# ---------------------------------------------------------------------------
def qa_sp_kernel(w_ref, x_ref, mask_ref, b_ref, out_ref):
    # In-kernel cast (no-op for the f32 path): avoids a separate XLA astype
    # pass over HBM; the cast is VPU filler hidden under the DMA stall.
    x = x_ref[...].astype(w_ref.dtype)
    # NOTE: RHS-transposed contraction (w[K,H] · x[tile_N,H]^T).  Verify with
    # pl.lower_as_mlir that this lowers to a transposed MXU feed and not an
    # XLU transpose of the large x tile; if a vxpose appears, restructure to
    # x @ w^T with a tiny [tile_N, 3] result transpose instead.
    logits = lax.dot_general(
        w_ref[...], x,
        dimension_numbers=(((1,), (1,)), ((), ())),
        preferred_element_type=jnp.float32)                    # [K, tile_N]
    logits = logits + b_ref[...]                               # [K,1] lane-bcast
    row_ids = lax.broadcasted_iota(jnp.int32, logits.shape, 0)
    maskable = row_ids < 2                                     # start/end only
    # Matches the PyTorch spec: masked_fill(paragraph_mask.ne(1), -inf).
    not_para = mask_ref[...] != 1                              # [1, tile_N]
    out_ref[...] = jnp.where(jnp.logical_and(maskable, not_para),
                             jnp.float32(-jnp.inf),
                             logits).astype(out_ref.dtype)


# ---------------------------------------------------------------------------
# Kernel 2: BertPooler (tanh(dense(first token))) + rank head, column-tiled.
#   x:  [B, H] (native dtype, resident)   wd: [H, tile_h]   bd: [1, tile_h]
#   wr: [1, tile_h] (f32)                 br: [1, 1]
#   pooled: [B, tile_h]   rank: [1, B] (lane-dense, accumulated over tiles)
# ---------------------------------------------------------------------------
def pooler_rank_kernel(x_ref, wd_ref, bd_ref, wr_ref, br_ref,
                       pooled_ref, rank_ref, acc_ref):
    j = pl.program_id(0)

    @pl.when(j == 0)
    def _():
        acc_ref[...] = jnp.zeros_like(acc_ref)

    x = x_ref[...].astype(wd_ref.dtype)
    pooled = jnp.tanh(jnp.dot(x, wd_ref[...],
                              preferred_element_type=jnp.float32) + bd_ref[...])
    pooled_ref[...] = pooled.astype(pooled_ref.dtype)
    acc_ref[...] += lax.dot_general(
        wr_ref[...], pooled,
        dimension_numbers=(((1,), (1,)), ((), ())),
        preferred_element_type=jnp.float32)                    # [1, B]
    rank_ref[...] = (acc_ref[...] + br_ref[...]).astype(rank_ref.dtype)


# ---------------------------------------------------------------------------
# One-time parameter packing (keep OUTSIDE the per-call forward path).
# ---------------------------------------------------------------------------
def pack_qa_params(params, matmul_dtype=jnp.bfloat16):
    w_head = jnp.concatenate([params["w_qa"], params["w_sp"]],
                             axis=1).T.astype(matmul_dtype)          # [3, H]
    b_head = jnp.concatenate([params["b_qa"][0], params["b_sp"][0]],
                             axis=0).reshape(3, 1).astype(jnp.float32)
    return {
        "w_head": w_head,                                            # [3, H]
        "b_head": b_head,                                            # [3, 1]
        "w_dense": params["w_dense"].astype(matmul_dtype),           # [H, H]
        "b_dense": params["b_dense"].astype(jnp.float32),            # [1, H]
        "w_rank_t": params["w_rank"].T.astype(jnp.float32),          # [1, H]
        "b_rank": params["b_rank"].astype(jnp.float32),              # [1, 1]
    }


# ---------------------------------------------------------------------------
# Wrapper (glue in plain JAX: reshapes, scalar gather, kernel plumbing)
# ---------------------------------------------------------------------------
def qa_model_forward(packed, sequence_output, paragraph_mask, sent_offsets):
    B, S, H = sequence_output.shape
    N = B * S
    K = 3  # [start, end, sp]
    in_dtype = sequence_output.dtype
    in_itemsize = jnp.dtype(in_dtype).itemsize
    w_head = packed["w_head"]
    w_itemsize = jnp.dtype(w_head.dtype).itemsize

    # No wrapper-side dtype cast of the big activation: reshape is metadata
    # only and the kernel streams the native-dtype array exactly once.
    x_flat = sequence_output.reshape(N, H)
    mask_flat = paragraph_mask.reshape(1, N).astype(jnp.int32)   # 4*N B, negligible

    tile_n = _pick_row_tile(N, H, in_itemsize)
    grid_n = N // tile_n

    x_tile_bytes = tile_n * H * in_itemsize
    out_tile_bytes = 8 * tile_n * 4            # (3→8 sublane padded) f32
    mask_tile_bytes = 8 * tile_n * 4
    w_bytes = 8 * H * w_itemsize
    qa_need = 2 * (x_tile_bytes + out_tile_bytes + mask_tile_bytes + w_bytes) + (64 << 10)

    head = pl.pallas_call(
        qa_sp_kernel,
        out_shape=jax.ShapeDtypeStruct((K, N), jnp.float32),
        grid_spec=pltpu.PrefetchScalarGridSpec(
            num_scalar_prefetch=0,
            grid=(grid_n,),
            in_specs=[
                pl.BlockSpec((K, H), lambda i: (0, 0)),        # fused weight (resident)
                pl.BlockSpec((tile_n, H), lambda i: (i, 0)),   # streamed rows (native dtype)
                pl.BlockSpec((1, tile_n), lambda i: (0, i)),   # lane-dense mask
                pl.BlockSpec((K, 1), lambda i: (0, 0)),        # fused bias (resident)
            ],
            out_specs=pl.BlockSpec((K, tile_n), lambda i: (0, i)),
        ),
        compiler_params=pltpu.CompilerParams(
            dimension_semantics=("parallel",),
            vmem_limit_bytes=_vmem_limit(qa_need)),
        cost_estimate=pl.CostEstimate(
            flops=2 * K * N * H,
            transcendentals=0,
            bytes_accessed=N * H * in_itemsize + (K + 1) * N * 4 + K * H * w_itemsize),
    )(w_head, x_flat, mask_flat, packed["b_head"])

    start_logits = head[0].reshape(B, S)
    end_logits = head[1].reshape(B, S)
    sp_all = head[2].reshape(B, S)
    # Gather only [B, M] scalars (instead of [B, M, H] hidden states).
    sp_score = jnp.take_along_axis(sp_all, sent_offsets.astype(jnp.int32), axis=1)

    # ---- BertPooler + rank (column-tiled dense; safe for large H) ----------
    first_token = sequence_output[:, 0, :]                       # [B, H] native dtype
    wd_itemsize = jnp.dtype(packed["w_dense"].dtype).itemsize
    tile_h = _pick_col_tile(H, wd_itemsize)
    grid_h = H // tile_h
    pool_need = (2 * (H * tile_h * wd_itemsize + 3 * 8 * tile_h * 4
                      + max(B, 8) * tile_h * 4)
                 + max(B, 8) * H * in_itemsize + (64 << 10))

    pooled_output, rank_row = pl.pallas_call(
        pooler_rank_kernel,
        out_shape=(jax.ShapeDtypeStruct((B, H), in_dtype),
                   jax.ShapeDtypeStruct((1, B), jnp.float32)),
        grid_spec=pltpu.PrefetchScalarGridSpec(
            num_scalar_prefetch=0,
            grid=(grid_h,),
            in_specs=[
                pl.BlockSpec((B, H), lambda j: (0, 0)),          # first-token acts (resident)
                pl.BlockSpec((H, tile_h), lambda j: (0, j)),     # dense weight col tile
                pl.BlockSpec((1, tile_h), lambda j: (0, j)),     # dense bias col tile
                pl.BlockSpec((1, tile_h), lambda j: (0, j)),     # rank weight col tile
                pl.BlockSpec((1, 1), lambda j: (0, 0)),          # rank bias
            ],
            out_specs=(pl.BlockSpec((B, tile_h), lambda j: (0, j)),
                       pl.BlockSpec((1, B), lambda j: (0, 0))),  # accumulator block
            scratch_shapes=[pltpu.VMEM((1, B), jnp.float32)],
        ),
        compiler_params=pltpu.CompilerParams(
            dimension_semantics=("arbitrary",),
            vmem_limit_bytes=_vmem_limit(pool_need)),
    )(first_token, packed["w_dense"], packed["b_dense"],
      packed["w_rank_t"], packed["b_rank"])

    rank_score = rank_row[0].reshape(B, 1)

    return {
        "start_logits": start_logits,
        "end_logits": end_logits,
        "rank_score": rank_score,
        "sp_score": sp_score,
        "pooled_output": pooled_output,
    }


# ---------------------------------------------------------------------------
# Pure-JAX reference (for correctness check)
# ---------------------------------------------------------------------------
def qa_model_reference(params, sequence_output, paragraph_mask, sent_offsets):
    logits = sequence_output @ params["w_qa"] + params["b_qa"][0]
    neg_inf = jnp.float32(-jnp.inf)
    not_para = (paragraph_mask != 1)
    start_logits = jnp.where(not_para, neg_inf, logits[..., 0])
    end_logits = jnp.where(not_para, neg_inf, logits[..., 1])
    pooled = jnp.tanh(sequence_output[:, 0, :] @ params["w_dense"]
                      + params["b_dense"][0])
    rank_score = pooled @ params["w_rank"] + params["b_rank"][0]
    gathered = jnp.take_along_axis(
        sequence_output, sent_offsets[:, :, None].astype(jnp.int32), axis=1)
    sp_score = (gathered @ params["w_sp"] + params["b_sp"][0])[..., 0]
    return {"start_logits": start_logits, "end_logits": end_logits,
            "rank_score": rank_score, "sp_score": sp_score}


# ---------------------------------------------------------------------------
# Deterministic parameter init
# ---------------------------------------------------------------------------
def init_params(key, hidden):
    ks = jax.random.split(key, 8)
    s = 0.02
    return {
        # BertPooler.dense: Linear(H, H)
        "w_dense": (jax.random.normal(ks[0], (hidden, hidden)) * s).astype(jnp.float32),
        "b_dense": (jax.random.normal(ks[1], (1, hidden)) * s).astype(jnp.float32),
        # qa_outputs: Linear(H, 2)
        "w_qa": (jax.random.normal(ks[2], (hidden, 2)) * s).astype(jnp.float32),
        "b_qa": (jax.random.normal(ks[3], (1, 2)) * s).astype(jnp.float32),
        # rank: Linear(H, 1)
        "w_rank": (jax.random.normal(ks[4], (hidden, 1)) * s).astype(jnp.float32),
        "b_rank": (jax.random.normal(ks[5], (1, 1)) * s).astype(jnp.float32),
        # sp: Linear(H, 1)
        "w_sp": (jax.random.normal(ks[6], (hidden, 1)) * s).astype(jnp.float32),
        "b_sp": (jax.random.normal(ks[7], (1, 1)) * s).astype(jnp.float32),
    }


if __name__ == "__main__":
    B, S, H, M = 2, 8, 32, 4

    key = jax.random.PRNGKey(0)
    k_par, k_seq, k_mask, k_off = jax.random.split(key, 4)

    params = init_params(k_par, H)
    sequence_output = jax.random.normal(k_seq, (B, S, H), dtype=jnp.float32)
    # paragraph_mask: 1 inside paragraph, 0 elsewhere (some zeros so masking matters)
    paragraph_mask = (jax.random.uniform(k_mask, (B, S)) > 0.25).astype(jnp.int32)
    # sentence-marker offsets into the sequence
    sent_offsets = jax.random.randint(k_off, (B, M), 0, S, dtype=jnp.int32)

    ref = qa_model_reference(params, sequence_output, paragraph_mask, sent_offsets)

    # f32 matmul path: tight correctness check against the pure-JAX reference.
    packed_f32 = pack_qa_params(params, matmul_dtype=jnp.float32)
    out = qa_model_forward(packed_f32, sequence_output, paragraph_mask, sent_offsets)
    out = jax.tree_util.tree_map(jax.block_until_ready, out)
    for name in ("start_logits", "end_logits", "rank_score", "sp_score"):
        assert out[name].shape == ref[name].shape, name
        assert jnp.allclose(out[name], ref[name], atol=1e-5, rtol=1e-5), name

    # bf16 matmul path (weights pre-cast once; activations cast in-kernel):
    # looser tolerance; -inf masked positions must still match exactly.
    packed_bf16 = pack_qa_params(params, matmul_dtype=jnp.bfloat16)
    out_bf16 = qa_model_forward(packed_bf16, sequence_output, paragraph_mask,
                                sent_offsets)
    out_bf16 = jax.tree_util.tree_map(jax.block_until_ready, out_bf16)
    for name in ("start_logits", "end_logits", "rank_score", "sp_score"):
        assert out_bf16[name].shape == ref[name].shape, name
        assert jnp.allclose(out_bf16[name], ref[name], atol=3e-2, rtol=3e-2), name

    print("KERNEL_OK")
</pallas_src>

<mosaic_0001>
module attributes {stable_mosaic.version = 11 : i64} {
  func.func @qa_sp_kernel(%arg0: i32, %arg1: memref<3x32xf32, #tpu.memory_space<vmem>>, %arg2: memref<16x32xf32, #tpu.memory_space<vmem>>, %arg3: memref<1x16xi32, #tpu.memory_space<vmem>>, %arg4: memref<3x1xf32, #tpu.memory_space<vmem>>, %arg5: memref<3x16xf32, #tpu.memory_space<vmem>>) attributes {dimension_semantics = [#tpu.dimension_semantics<parallel>], iteration_bounds = array<i64: 1>, scalar_prefetch = 0 : i64, scratch_operands = 0 : i64, tpu.core_type = #tpu.core_type<tc>, window_params = [{pipeline_mode = #tpu.pipeline_mode<synchronous>, transform_indices = @transform_0, window_bounds = array<i64: 3, 32>}, {transform_indices = @transform_1, window_bounds = array<i64: 16, 32>}, {transform_indices = @transform_2, window_bounds = array<i64: 1, 16>}, {pipeline_mode = #tpu.pipeline_mode<synchronous>, transform_indices = @transform_3, window_bounds = array<i64: 3, 1>}, {transform_indices = @transform_4, window_bounds = array<i64: 3, 16>}]} {
    %c0 = arith.constant 0 : index
    %c0_0 = arith.constant 0 : index
    %0 = vector.load %arg2[%c0, %c0_0] : memref<16x32xf32, #tpu.memory_space<vmem>>, vector<16x32xf32>
    %c0_1 = arith.constant 0 : index
    %c0_2 = arith.constant 0 : index
    %1 = vector.load %arg1[%c0_1, %c0_2] : memref<3x32xf32, #tpu.memory_space<vmem>>, vector<3x32xf32>
    %cst = arith.constant dense<0.000000e+00> : vector<3x16xf32>
    %2 = tpu.matmul %1, %0, %cst {dimension_numbers = #tpu.dot_dimension_numbers<[1], [1], [0], [0], [0, 0, 1, 0], [], []>} : vector<3x32xf32>, vector<16x32xf32>, vector<3x16xf32> -> vector<3x16xf32>
    %c0_3 = arith.constant 0 : index
    %c0_4 = arith.constant 0 : index
    %3 = vector.load %arg4[%c0_3, %c0_4] : memref<3x1xf32, #tpu.memory_space<vmem>>, vector<3x1xf32>
    %4 = vector.broadcast %3 : vector<3x1xf32> to vector<3x16xf32>
    %5 = arith.addf %2, %4 : vector<3x16xf32>
    %6 = tpu.iota {dimensions = array<i32: 0>} : vector<3x16xi32>
    %c2_i32 = arith.constant 2 : i32
    %7 = vector.broadcast %c2_i32 : i32 to vector<3x16xi32>
    %8 = arith.cmpi slt, %6, %7 : vector<3x16xi32>
    %c0_5 = arith.constant 0 : index
    %c0_6 = arith.constant 0 : index
    %9 = vector.load %arg3[%c0_5, %c0_6] : memref<1x16xi32, #tpu.memory_space<vmem>>, vector<1x16xi32>
    %c1_i32 = arith.constant 1 : i32
    %10 = vector.broadcast %c1_i32 : i32 to vector<1x16xi32>
    %11 = arith.cmpi ne, %9, %10 : vector<1x16xi32>
    %12 = vector.broadcast %11 : vector<1x16xi1> to vector<3x16xi1>
    %13 = arith.andi %8, %12 : vector<3x16xi1>
    %cst_7 = arith.constant 0xFF800000 : f32
    %14 = vector.broadcast %cst_7 : f32 to vector<3x16xf32>
    %15 = arith.select %13, %14, %5 : vector<3x16xi1>, vector<3x16xf32>
    %c0_8 = arith.constant 0 : index
    %c0_9 = arith.constant 0 : index
    %16 = vector.load %arg5[%c0_8, %c0_9] : memref<3x16xf32, #tpu.memory_space<vmem>>, vector<3x16xf32>
    tpu.vector_store %arg5[%c0_8, %c0_9], %15 {strides = array<i32>} : memref<3x16xf32, #tpu.memory_space<vmem>>, vector<3x16xf32>,
    return
  }
  func.func @transform_0(%arg0: i32) -> (i32, i32) {
    %c0_i32 = arith.constant 0 : i32
    %c0_i32_0 = arith.constant 0 : i32
    %c0_i32_1 = arith.constant 0 : i32
    return %c0_i32, %c0_i32_0 : i32, i32
  }
  func.func @transform_1(%arg0: i32) -> (i32, i32) {
    %c0_i32 = arith.constant 0 : i32
    %c0_i32_0 = arith.constant 0 : i32
    return %arg0, %c0_i32 : i32, i32
  }
  func.func @transform_2(%arg0: i32) -> (i32, i32) {
    %c0_i32 = arith.constant 0 : i32
    %c0_i32_0 = arith.constant 0 : i32
    return %c0_i32, %arg0 : i32, i32
  }
  func.func @transform_3(%arg0: i32) -> (i32, i32) {
    %c0_i32 = arith.constant 0 : i32
    %c0_i32_0 = arith.constant 0 : i32
    %c0_i32_1 = arith.constant 0 : i32
    return %c0_i32, %c0_i32_0 : i32, i32
  }
  func.func @transform_4(%arg0: i32) -> (i32, i32) {
    %c0_i32 = arith.constant 0 : i32
    %c0_i32_0 = arith.constant 0 : i32
    return %c0_i32, %arg0 : i32, i32
  }
}

</mosaic_0001>

<bundles_post_ra>
// kernel: tpu_custom_call.1
= control target key start
LH: loop header
LB: loop body
LE: loop exit
PB: predicated region body
PF: predicated region fallthrough
CT: control target
= control target key end

     0   :  { %9 = vsyncpa [#allocation3], 0  ;;  %s263_s0 = inlined_call_operand.vmem [shape: f32[3,32], index: 0, kind: input, shape index: {}]   ;;  %s264_s1 = inlined_call_operand.hbm [shape: f32[16,32], index: 1, kind: input, shape index: {}]   ;;  %s265_s2 = inlined_call_operand.vmem [shape: s32[1,16], index: 2, kind: input, shape index: {}]   ;;  %s266_s3 = inlined_call_operand.vmem [shape: f32[3,1], index: 3, kind: input, shape index: {}]   ;;  %s267_s4 = inlined_call_operand.hbm [shape: f32[3,16], index: 4, kind: output, shape index: {}]  }
   0x1   :  { %10 = vsyncpa [#allocation4], 0  ;;  %s216_s15 = smov [#allocation2]  }
   0x2   :  { %s18_s16 = sshll.u32 %s216_s15, 4  ;;  %s19_s16 = int_to_ptr.vmem [resolvable:$true] %s18_s16 }
   0x3   :  { %s180_s17 = scalar_lea.vmem %s19_s16, 256  ;;  %p185_p1 = scmp.lt.s32.totalorder %s19_s16, %s19_s16 }
   0x4   :  { %p181_p0 = scmp.ne.s32.totalorder %s19_s16, %s180_s17  ;;  %p186_p2 = scmp.lt.s32.totalorder %s180_s17, %s180_s17 }
   0x6   :  { %p187_p3 = por %p186_p2, %p185_p1 }
   0x8   :  { %p188_p4 = pnand %p187_p3, %p181_p0 }
   0xa   :  { %191 = shalt.err (!%p188_p4)
}
   0xb   :  { %s217_s18 = smov 128   ;;  %s218_s19 = smov 8  }
   0xc   :  { %24 = dma.hbm_to_vmem [thread:$0]  %s264_s1, 256, %s19_s16, [#allocation3], %s217_s18, %s217_s18, %s218_s19  }
   0xd   :  { %212 = dma.done.wait [#allocation3], 256  }
   0xe   :  { %213 = vsyncadd [#allocation3], 4294967040  ;;  %v219_v0 = vmov 0.0   ;;  %vm220_vm0 = vmmov 0   ;;  %v221_v1 = vmov 0   ;;  %vm41_vm1 = vcmask 261120  }
   0xf   :  { %157 = vmatprep.subr.mxu0 %v219_v0  ;;  %161 = vmatprep.mubr.msk.f32.mxu0 %vm220_vm0, %v219_v0  ;;  %v33_v2 = vld [vmem:[#allocation2 + $0x8] sm:$0xff]  ;;  %v35_v3 = vld [vmem:[%s266_s3] sm:$0x7]  ;;  %v121_v6 = vlaneseq  ;;  %s222_s3 = smov [#allocation5]   ;;  %vm134_vm6 = vcmask 124928  }
  0x10   :  { %171 = vset.pattern.permute.xlu0 %v221_v1  ;;  %158 = vmatpush3.xpose.msk.msra.mxu0 %vm41_vm1, %v33_v2  ;;  %v32_v4 = vld [vmem:[#allocation2] sm:$0xff]  ;;  %s142_s27 = sshll.u32 %s222_s3, 4  ;;  %s143_s27 = int_to_ptr.vmem [resolvable:$true] %s142_s27 }
  0x11   :  { %159 = vmatprep.subr.mxu0 %v219_v0  ;;  %38 = vperm.xlu0 %171, %v35_v3   ;;  %v34_v5 = vld [vmem:[%s263_s0] sm:$0x7]  ;;  %v122_v8 = vshrl.u32 %v121_v6, 7  ;;  %s192_s0 = scalar_lea.vmem %s143_s27, 64  ;;  %p197_p6 = scmp.lt.s32.totalorder %s143_s27, %s143_s27 }
  0x12   :  { %v124_v7 = vld [vmem:[%s265_s2] sm:$0x1]  ;;  %p193_p5 = scmp.ne.s32.totalorder %s143_s27, %s192_s0  ;;  %p198_p7 = scmp.lt.s32.totalorder %s192_s0, %s192_s0 }
  0x13   :  { %vm125_vm2 = vcmp.ne.s32.totalorder %v124_v7, 1  ;;  %v129_v9 = vsub.s32 0, %v122_v8  ;;  %vm123_vm4 = vcmp.lt.s32.totalorder %v122_v8, 2 }
  0x14   :  { %160 = vmatpush3.xpose.msk.msra.mxu0 %vm41_vm1, %v32_v4  ;;  %v126_v10 = vsel %vm125_vm2, 1, %v221_v1  ;;  %p199_p8 = por %p198_p7, %p197_p6 }
  0x15   :  { %v130_v11 = vrot.slane %v126_v10, %v129_v9 }
  0x16   :  { %p200_p9 = pnand %p199_p8, %p193_p5 }
  0x17   :  { %162 = vmatmul.mubr.msk.f32.vlgmr.msra.gmra.mxu0 %vm41_vm1, %v34_v5  ;;  %vm131_vm3 = vcmp.eq.s32.totalorder %v130_v11, 1 }
  0x18   :  { %vm132_vm5 = vmand %vm123_vm4, %vm131_vm3 }
  0x8c   :  { %v39_v12 = vpop.permute.xlu0 %38 }
  0xd7   :  { %v117_v13 = vpop.f32.mrf.mxu0 }
  0xd8   :  { %v118_v14 = vadd.f32 %v117_v13, %v39_v12 }
  0xd9   :  { %v163_v15 = vpop.f32.mrf.mxu0 }
  0xda   :  { %v133_v16 = vsel %vm132_vm5, -inf, %v118_v14 }
  0xdb   :  { %135 = vst.msk [vmem:[#allocation5] sm:$0x7] %vm134_vm6, %v133_v16 }
  0xdc   :  { %203 = shalt.err (!%p200_p9)
}
  0xdd   :  { %145 = dma.vmem_to_hbm [thread:$0]  %s143_s27, 64, %s267_s4, [#allocation4]  }
  0xde   :  { %214 = dma.done.wait [#allocation4], 64  }
  0xdf   :  { %215 = vsyncadd [#allocation4], 4294967232 }
  0xe0   :  { %149 = vsyncpa [#allocation3], 1 }
  0xe1   :  { %150 = vsyncpa [#allocation4], 1 }

</bundles_post_ra>
